<compile_context>
chip_gen: v7x
topology: tpu7x:2x2x1
jax: 0.10.0
libtpu: 0.0.40
codegen_flags: <defaults>
</compile_context>

<pallas_src>
import jax
import jax.numpy as jnp
from jax.experimental import pallas as pl
from jax.experimental.pallas import tpu as pltpu


def _round_up(a, m):
    return ((a + m - 1) // m) * m


def mlp_kernel(x_ref, w1_ref, b1_ref, w2_ref, b2_ref, o_ref):
    # Fused hot path, entirely in VMEM:
    #   (TB, D_in) @ (D_in, H) -> +b1 -> ReLU -> @ (H, D_out) -> +b2
    # x arrives as f32 from HBM and is cast to the matmul operand dtype here
    # (VPU cast; avoids a separate full-HBM cast pass in the wrapper).
    x = x_ref[...].astype(w1_ref.dtype)                                # (TB, D_in)
    h = jnp.dot(x, w1_ref[...], preferred_element_type=jnp.float32)   # MXU, f32 acc
    h = jnp.maximum(h + b1_ref[...], 0.0)                             # VPU, f32 bias+ReLU
    h = h.astype(w2_ref.dtype)                                        # back to MXU input dtype
    y = jnp.dot(h, w2_ref[...], preferred_element_type=jnp.float32)   # MXU, f32 acc
    o_ref[...] = (y + b2_ref[...]).astype(o_ref.dtype)


def wav2vec2_mlp_forward(x, w1, b1, w2, b2, *, block_rows=4096,
                         compute_dtype=jnp.bfloat16):
    """Forward pass of wav2vec2_MLP.

    x:  (B, D_in) f32
    w1: (D_in, H) f32, b1: (1, H) or (H,) f32
    w2: (H, D_out) f32, b2: (1, D_out) or (D_out,) f32
    block_rows: row-tile size (rounded to a multiple of 8).
    compute_dtype: matmul operand dtype (default bf16). Accumulation, bias
        add, ReLU and the output remain f32.
    """
    B, D_in = x.shape
    H = w1.shape[1]
    D_out = w2.shape[1]

    # Weights cast once at trace time (tiny); x stays f32 and is cast in-kernel.
    w1 = w1.astype(compute_dtype)
    w2 = w2.astype(compute_dtype)
    b1 = b1.astype(jnp.float32).reshape(1, H)
    b2 = b2.astype(jnp.float32).reshape(1, D_out)

    # Row tile: multiple of 8 (sublane), capped by block_rows. Clamp so the
    # grid has at least 2 steps whenever possible (v7x megacore sharding).
    B8 = _round_up(B, 8)
    TB = min(_round_up(max(block_rows, 8), 8), B8)
    if B8 > 8:
        TB = min(TB, max(8, _round_up(pl.cdiv(B8, 2), 8)))

    # Non-divisible row counts are handled by Pallas partial-block masking;
    # no wrapper-level jnp.pad (avoids an extra full HBM pass over x).
    grid = (pl.cdiv(B, TB),)

    out = pl.pallas_call(
        mlp_kernel,
        out_shape=jax.ShapeDtypeStruct((B, D_out), jnp.float32),
        grid=grid,
        in_specs=[
            pl.BlockSpec((TB, D_in), lambda i: (i, 0)),   # streamed row tiles
            pl.BlockSpec((D_in, H), lambda i: (0, 0)),    # resident weights
            pl.BlockSpec((1, H), lambda i: (0, 0)),       # resident bias 1
            pl.BlockSpec((H, D_out), lambda i: (0, 0)),   # resident weights
            pl.BlockSpec((1, D_out), lambda i: (0, 0)),   # resident bias 2
        ],
        out_specs=pl.BlockSpec((TB, D_out), lambda i: (i, 0)),
        compiler_params=pltpu.CompilerParams(
            dimension_semantics=("parallel",),            # shard rows across TCs (v7x)
        ),
    )(x, w1, b1, w2, b2)

    return out


def init_params(key, input_dim, hidden_dim, output_dim):
    """Deterministic init mimicking PyTorch nn.Linear default U(-1/sqrt(fan_in), 1/sqrt(fan_in))."""
    k1, k2, k3, k4 = jax.random.split(key, 4)
    bound1 = 1.0 / jnp.sqrt(input_dim)
    bound2 = 1.0 / jnp.sqrt(hidden_dim)
    w1 = jax.random.uniform(k1, (input_dim, hidden_dim), jnp.float32, -bound1, bound1)
    b1 = jax.random.uniform(k2, (1, hidden_dim), jnp.float32, -bound1, bound1)
    w2 = jax.random.uniform(k3, (hidden_dim, output_dim), jnp.float32, -bound2, bound2)
    b2 = jax.random.uniform(k4, (1, output_dim), jnp.float32, -bound2, bound2)
    return w1, b1, w2, b2


if __name__ == "__main__":
    # Shapes consistent with the module: input_dim=32, hidden=256, output_dim=8.
    B, INPUT_DIM, HIDDEN, OUTPUT_DIM = 8, 32, 256, 8

    key = jax.random.PRNGKey(0)
    kx, kp = jax.random.split(key)
    x = jax.random.normal(kx, (B, INPUT_DIM), jnp.float32)
    w1, b1, w2, b2 = init_params(kp, INPUT_DIM, HIDDEN, OUTPUT_DIM)
    ref = jnp.maximum(x @ w1 + b1, 0.0) @ w2 + b2

    # 1) f32 operand path (exact), single grid step.
    out_f32 = jax.block_until_ready(
        wav2vec2_mlp_forward(x, w1, b1, w2, b2, compute_dtype=jnp.float32))
    assert out_f32.shape == (B, OUTPUT_DIM)
    assert jnp.allclose(out_f32, ref, atol=1e-4, rtol=1e-4)

    # 2) Default bf16 operand path (f32 accumulation / bias / ReLU).
    out_bf16 = jax.block_until_ready(wav2vec2_mlp_forward(x, w1, b1, w2, b2))
    assert out_bf16.shape == (B, OUTPUT_DIM)
    assert jnp.allclose(out_bf16, ref, atol=5e-2, rtol=5e-2)

    # 3) Multi-step grid with a non-divisible row count (exercises tiling +
    #    partial-last-block masking, i.e. the production batch*time layout).
    B2 = 300
    x2 = jax.random.normal(jax.random.PRNGKey(1), (B2, INPUT_DIM), jnp.float32)
    ref2 = jnp.maximum(x2 @ w1 + b1, 0.0) @ w2 + b2

    out2 = jax.block_until_ready(
        wav2vec2_mlp_forward(x2, w1, b1, w2, b2, block_rows=128,
                             compute_dtype=jnp.float32))
    assert out2.shape == (B2, OUTPUT_DIM)
    assert jnp.allclose(out2, ref2, atol=1e-4, rtol=1e-4)

    out3 = jax.block_until_ready(
        wav2vec2_mlp_forward(x2, w1, b1, w2, b2, block_rows=128))
    assert out3.shape == (B2, OUTPUT_DIM)
    assert jnp.allclose(out3, ref2, atol=5e-2, rtol=5e-2)

    print("KERNEL_OK")
</pallas_src>

<mosaic_0001>
module attributes {stable_mosaic.version = 11 : i64} {
  func.func @mlp_kernel(%arg0: i32, %arg1: memref<8x32xf32, #tpu.memory_space<vmem>>, %arg2: memref<32x256xf32, #tpu.memory_space<vmem>>, %arg3: memref<1x256xf32, #tpu.memory_space<vmem>>, %arg4: memref<256x8xf32, #tpu.memory_space<vmem>>, %arg5: memref<1x8xf32, #tpu.memory_space<vmem>>, %arg6: memref<8x8xf32, #tpu.memory_space<vmem>>) attributes {dimension_semantics = [#tpu.dimension_semantics<parallel>], iteration_bounds = array<i64: 1>, scalar_prefetch = 0 : i64, scratch_operands = 0 : i64, tpu.core_type = #tpu.core_type<tc>, window_params = [{transform_indices = @transform_0, window_bounds = array<i64: 8, 32>}, {pipeline_mode = #tpu.pipeline_mode<synchronous>, transform_indices = @transform_1, window_bounds = array<i64: 32, 256>}, {pipeline_mode = #tpu.pipeline_mode<synchronous>, transform_indices = @transform_2, window_bounds = array<i64: 1, 256>}, {pipeline_mode = #tpu.pipeline_mode<synchronous>, transform_indices = @transform_3, window_bounds = array<i64: 256, 8>}, {pipeline_mode = #tpu.pipeline_mode<synchronous>, transform_indices = @transform_4, window_bounds = array<i64: 1, 8>}, {transform_indices = @transform_5, window_bounds = array<i64: 8, 8>}]} {
    %c0 = arith.constant 0 : index
    %c0_0 = arith.constant 0 : index
    %0 = vector.load %arg1[%c0, %c0_0] : memref<8x32xf32, #tpu.memory_space<vmem>>, vector<8x32xf32>
    %c0_1 = arith.constant 0 : index
    %c0_2 = arith.constant 0 : index
    %1 = vector.load %arg2[%c0_1, %c0_2] : memref<32x256xf32, #tpu.memory_space<vmem>>, vector<32x256xf32>
    %cst = arith.constant dense<0.000000e+00> : vector<8x256xf32>
    %2 = tpu.matmul %0, %1, %cst {dimension_numbers = #tpu.dot_dimension_numbers<[1], [0], [0], [1], [0, 0, 1, 1], [], []>} : vector<8x32xf32>, vector<32x256xf32>, vector<8x256xf32> -> vector<8x256xf32>
    %c0_3 = arith.constant 0 : index
    %c0_4 = arith.constant 0 : index
    %3 = vector.load %arg3[%c0_3, %c0_4] : memref<1x256xf32, #tpu.memory_space<vmem>>, vector<1x256xf32>
    %4 = vector.broadcast %3 : vector<1x256xf32> to vector<8x256xf32>
    %5 = arith.addf %2, %4 : vector<8x256xf32>
    %cst_5 = arith.constant 0.000000e+00 : f32
    %6 = vector.broadcast %cst_5 : f32 to vector<8x256xf32>
    %7 = arith.maximumf %5, %6 : vector<8x256xf32>
    %c0_6 = arith.constant 0 : index
    %c0_7 = arith.constant 0 : index
    %8 = vector.load %arg4[%c0_6, %c0_7] : memref<256x8xf32, #tpu.memory_space<vmem>>, vector<256x8xf32>
    %cst_8 = arith.constant dense<0.000000e+00> : vector<8x8xf32>
    %9 = tpu.matmul %7, %8, %cst_8 {dimension_numbers = #tpu.dot_dimension_numbers<[1], [0], [0], [1], [0, 0, 1, 1], [], []>} : vector<8x256xf32>, vector<256x8xf32>, vector<8x8xf32> -> vector<8x8xf32>
    %c0_9 = arith.constant 0 : index
    %c0_10 = arith.constant 0 : index
    %10 = vector.load %arg5[%c0_9, %c0_10] : memref<1x8xf32, #tpu.memory_space<vmem>>, vector<1x8xf32>
    %11 = vector.broadcast %10 : vector<1x8xf32> to vector<8x8xf32>
    %12 = arith.addf %9, %11 : vector<8x8xf32>
    %c0_11 = arith.constant 0 : index
    %c0_12 = arith.constant 0 : index
    %13 = vector.load %arg6[%c0_11, %c0_12] : memref<8x8xf32, #tpu.memory_space<vmem>>, vector<8x8xf32>
    tpu.vector_store %arg6[%c0_11, %c0_12], %12 {strides = array<i32>} : memref<8x8xf32, #tpu.memory_space<vmem>>, vector<8x8xf32>,
    return
  }
  func.func @transform_0(%arg0: i32) -> (i32, i32) {
    %c0_i32 = arith.constant 0 : i32
    %c0_i32_0 = arith.constant 0 : i32
    return %arg0, %c0_i32 : i32, i32
  }
  func.func @transform_1(%arg0: i32) -> (i32, i32) {
    %c0_i32 = arith.constant 0 : i32
    %c0_i32_0 = arith.constant 0 : i32
    %c0_i32_1 = arith.constant 0 : i32
    return %c0_i32, %c0_i32_0 : i32, i32
  }
  func.func @transform_2(%arg0: i32) -> (i32, i32) {
    %c0_i32 = arith.constant 0 : i32
    %c0_i32_0 = arith.constant 0 : i32
    %c0_i32_1 = arith.constant 0 : i32
    return %c0_i32, %c0_i32_0 : i32, i32
  }
  func.func @transform_3(%arg0: i32) -> (i32, i32) {
    %c0_i32 = arith.constant 0 : i32
    %c0_i32_0 = arith.constant 0 : i32
    %c0_i32_1 = arith.constant 0 : i32
    return %c0_i32, %c0_i32_0 : i32, i32
  }
  func.func @transform_4(%arg0: i32) -> (i32, i32) {
    %c0_i32 = arith.constant 0 : i32
    %c0_i32_0 = arith.constant 0 : i32
    %c0_i32_1 = arith.constant 0 : i32
    return %c0_i32, %c0_i32_0 : i32, i32
  }
  func.func @transform_5(%arg0: i32) -> (i32, i32) {
    %c0_i32 = arith.constant 0 : i32
    %c0_i32_0 = arith.constant 0 : i32
    return %arg0, %c0_i32 : i32, i32
  }
}

</mosaic_0001>

<bundles_post_ra>
// kernel: tpu_custom_call.1
= control target key start
LH: loop header
LB: loop body
LE: loop exit
PB: predicated region body
PF: predicated region fallthrough
CT: control target
= control target key end

     0   :  { %v347_v7 = vmov 0.0   ;;  %vm42_vm0 = vcmask 261120   ;;  %s520_s0 = inlined_call_operand.vmem [shape: f32[8,32], index: 0, kind: input, shape index: {}]   ;;  %s521_s1 = inlined_call_operand.vmem [shape: f32[32,256], index: 1, kind: input, shape index: {}]   ;;  %s522_s2 = inlined_call_operand.vmem [shape: f32[1,256], index: 2, kind: input, shape index: {}]   ;;  %s523_s3 = inlined_call_operand.vmem [shape: f32[256,8], index: 3, kind: input, shape index: {}]   ;;  %s524_s4 = inlined_call_operand.vmem [shape: f32[1,8], index: 4, kind: input, shape index: {}]   ;;  %s525_s5 = inlined_call_operand.hbm [shape: f32[8,8], index: 5, kind: output, shape index: {}]  }
   0x1   :  { %v23_v0 = vld [vmem:[%s521_s1 + $0x8] sm:$0xff]  ;;  %v25_v1 = vld [vmem:[%s521_s1 + $0x18] sm:$0xff]  ;;  %v22_v2 = vld [vmem:[%s521_s1] sm:$0xff]  ;;  %110 = vmatprep.mubr.f32.mxu0 %v347_v7 }
   0x2   :  { %v281_v3 = vpack.c.bf16 %v25_v1, %v23_v0  ;;  %v24_v4 = vld [vmem:[%s521_s1 + $0x10] sm:$0xff]  ;;  %v27_v5 = vld [vmem:[%s521_s1 + $0x28] sm:$0xff]  ;;  %v29_v6 = vld [vmem:[%s521_s1 + $0x38] sm:$0xff] }
   0x3   :  { %v283_v8 = vpack.c.bf16 %v24_v4, %v22_v2  ;;  %v285_v9 = vpack.c.bf16 %v29_v6, %v27_v5  ;;  %v26_v10 = vld [vmem:[%s521_s1 + $0x20] sm:$0xff]  ;;  %v28_v11 = vld [vmem:[%s521_s1 + $0x30] sm:$0xff]  ;;  %v136_v13 = vld [vmem:[%s523_s3 + $0x88] sm:$0xff] }
   0x4   :  { %282 = vmatprep.subr.bf16.mxu0 %v281_v3  ;;  %v135_v12 = vld [vmem:[%s523_s3 + $0x80] sm:$0xff]  ;;  %v287_v15 = vpack.c.bf16 %v28_v11, %v26_v10  ;;  %v120_v17 = vld [vmem:[%s523_s3 + $0x8] sm:$0xff]  ;;  %v137_v18 = vld [vmem:[%s523_s3 + $0x90] sm:$0xff] }
   0x5   :  { %v119_v14 = vld [vmem:[%s523_s3] sm:$0xff]  ;;  %284 = vmatpush1.bf16.msra.mxu0 %v283_v8  ;;  %v289_v16 = vpack.c.bf16 %v136_v13, %v135_v12  ;;  %v138_v19 = vld [vmem:[%s523_s3 + $0x98] sm:$0xff]  ;;  %v121_v22 = vld [vmem:[%s523_s3 + $0x10] sm:$0xff] }
   0x6   :  { %286 = vmatprep.subr.bf16.mxu0 %v285_v9  ;;  %v291_v20 = vpack.c.bf16 %v120_v17, %v119_v14  ;;  %v293_v21 = vpack.c.bf16 %v138_v19, %v137_v18  ;;  %v122_v23 = vld [vmem:[%s523_s3 + $0x18] sm:$0xff]  ;;  %v139_v24 = vld [vmem:[%s523_s3 + $0xa0] sm:$0xff]  ;;  %v140_v25 = vld [vmem:[%s523_s3 + $0xa8] sm:$0xff] }
   0x7   :  { %290 = vmatprep.subr.bf16.mxu1 %v289_v16  ;;  %v295_v26 = vpack.c.bf16 %v122_v23, %v121_v22  ;;  %v21_v27 = vld [vmem:[%s520_s0] sm:$0xff]  ;;  %v297_v28 = vpack.c.bf16 %v140_v25, %v139_v24  ;;  %v124_v30 = vld [vmem:[%s523_s3 + $0x28] sm:$0xff]  ;;  %v141_v31 = vld [vmem:[%s523_s3 + $0xb0] sm:$0xff] }
   0x8   :  { %292 = vmatpush3.bf16.msra.mxu1 %v291_v20  ;;  %v123_v29 = vld [vmem:[%s523_s3 + $0x20] sm:$0xff]  ;;  %v142_v32 = vld [vmem:[%s523_s3 + $0xb8] sm:$0xff]  ;;  %v125_v35 = vld [vmem:[%s523_s3 + $0x30] sm:$0xff] }
   0x9   :  { %288 = vmatpush1.bf16.msra.mxu0 %v287_v15  ;;  %294 = vmatprep.subr.bf16.mxu1 %v293_v21  ;;  %v299_v33 = vpack.c.bf16 %v124_v30, %v123_v29  ;;  %v301_v34 = vpack.c.bf16 %v142_v32, %v141_v31  ;;  %v126_v36 = vld [vmem:[%s523_s3 + $0x38] sm:$0xff] }
   0xc   :  { %244 = vmatmul.mubr.msk.f32.vlgmr.msra.gmra.mrb[0].mxu0 %vm42_vm0, %v21_v27  ;;  %296 = vmatpush3.bf16.msra.mxu1 %v295_v26 }
   0xd   :  { %298 = vmatprep.subr.bf16.mxu1 %v297_v28 }
   0xe   :  { %10 = vsyncpa [#allocation3], 0  ;;  %v143_v37 = vld [vmem:[%s523_s3 + $0xc0] sm:$0xff]  ;;  %v144_v38 = vld [vmem:[%s523_s3 + $0xc8] sm:$0xff]  ;;  %v303_v39 = vpack.c.bf16 %v126_v36, %v125_v35  ;;  %v32_v62 = vlaneseq  ;;  %s348_s23 = smov [#allocation2]   ;;  %vm228_vm1 = vcmask 64512  }
   0xf   :  { %v305_v40 = vpack.c.bf16 %v144_v38, %v143_v37  ;;  %v127_v41 = vld [vmem:[%s523_s3 + $0x40] sm:$0xff]  ;;  %v128_v42 = vld [vmem:[%s523_s3 + $0x48] sm:$0xff]  ;;  %v145_v43 = vld [vmem:[%s523_s3 + $0xd0] sm:$0xff]  ;;  %s236_s24 = sshll.u32 %s348_s23, 4  ;;  %s237_s24 = int_to_ptr.vmem [resolvable:$true] %s236_s24 }
  0x10   :  { %300 = vmatpush3.bf16.msra.mxu1 %v299_v33  ;;  %v146_v44 = vld [vmem:[%s523_s3 + $0xd8] sm:$0xff]  ;;  %v307_v45 = vpack.c.bf16 %v128_v42, %v127_v41  ;;  %v129_v47 = vld [vmem:[%s523_s3 + $0x50] sm:$0xff]  ;;  %v147_v49 = vld [vmem:[%s523_s3 + $0xe0] sm:$0xff]  ;;  %v33_v63 = vshrl.u32 %v32_v62, 7  ;;  %p328_p1 = scmp.lt.s32.totalorder %s237_s24, %s237_s24 }
  0x11   :  { %302 = vmatprep.subr.bf16.mxu1 %v301_v34  ;;  %v309_v46 = vpack.c.bf16 %v146_v44, %v145_v43  ;;  %v130_v48 = vld [vmem:[%s523_s3 + $0x58] sm:$0xff]  ;;  %v148_v50 = vld [vmem:[%s523_s3 + $0xe8] sm:$0xff]  ;;  %v131_v53 = vld [vmem:[%s523_s3 + $0x60] sm:$0xff] }
  0x12   :  { %v311_v51 = vpack.c.bf16 %v130_v48, %v129_v47  ;;  %v313_v52 = vpack.c.bf16 %v148_v50, %v147_v49  ;;  %v132_v54 = vld [vmem:[%s523_s3 + $0x68] sm:$0xff]  ;;  %v149_v56 = vld [vmem:[%s523_s3 + $0xf0] sm:$0xff]  ;;  %v150_v57 = vld [vmem:[%s523_s3 + $0xf8] sm:$0xff]  ;;  %v34_v0 = vsub.s32 0, %v33_v63  ;;  %v38_v2 = vsub.s32 1, %v33_v63 }
  0x13   :  { %v315_v55 = vpack.c.bf16 %v132_v54, %v131_v53  ;;  %v317_v58 = vpack.c.bf16 %v150_v57, %v149_v56  ;;  %v133_v59 = vld [vmem:[%s523_s3 + $0x70] sm:$0xff]  ;;  %v134_v60 = vld [vmem:[%s523_s3 + $0x78] sm:$0xff]  ;;  %v30_v1 = vld [vmem:[%s522_s2] sm:$0x3]  ;;  %s323_s2 = scalar_lea.vmem %s237_s24, 128 }
  0x14   :  { %304 = vmatpush3.bf16.msra.mxu1 %v303_v39  ;;  %v319_v61 = vpack.c.bf16 %v134_v60, %v133_v59  ;;  %v35_v3 = vrot.slane %v30_v1, %v34_v0  ;;  %v39_v4 = vrot.slane %v30_v1, %v38_v2  ;;  %v245_v12 = vld [vmem:[%s524_s4] ss:$0 sm:$0xff]  ;;  %p324_p0 = scmp.ne.s32.totalorder %s237_s24, %s323_s2  ;;  %p329_p2 = scmp.lt.s32.totalorder %s323_s2, %s323_s2 }
  0x15   :  { %306 = vmatprep.subr.bf16.mxu1 %v305_v40 }
  0x16   :  { %p330_p3 = por %p329_p2, %p328_p1 }
  0x18   :  { %308 = vmatpush3.bf16.msra.mxu1 %v307_v45  ;;  %p331_p4 = pnand %p330_p3, %p324_p0 }
  0x19   :  { %310 = vmatprep.subr.bf16.mxu1 %v309_v46 }
  0x1c   :  { %312 = vmatpush3.bf16.msra.mxu1 %v311_v51 }
  0x1d   :  { %314 = vmatprep.subr.bf16.mxu1 %v313_v52 }
  0x20   :  { %316 = vmatpush3.bf16.msra.mxu1 %v315_v55 }
  0x21   :  { %318 = vmatprep.subr.bf16.mxu1 %v317_v58 }
  0x24   :  { %320 = vmatpush3.bf16.msra.mxu1 %v319_v61 }
  0xdf   :  { %v112_v5 = vpop.f32.mrb[0].mxu0 }
  0xe0   :  { %v113_v6 = vadd.f32 %v112_v5, %v35_v3  ;;  %v114_v7 = vpop.f32.mrb[1].mxu0 }
  0xe1   :  { %v115_v8 = vadd.f32 %v114_v7, %v39_v4 }
  0xe2   :  { %v117_v10 = vmax.f32 %v113_v6, 0.0 }
  0xe3   :  { %v118_v9 = vmax.f32 %v115_v8, 0.0 }
  0xe5   :  { %222 = vmatprep.mubr.f32.mxu1 %v118_v9 }
  0xe6   :  { %223 = vmatmul.mubr.f32.vlgmr.msra.gmra.mrb[0].mxu1 %v117_v10 }
 0x1b9   :  { %v278_v11 = vpop.f32.mrb[0].mxu1 }
 0x1ba   :  { %v279_v13 = vpop.f32.mrb[1].mxu1 }
 0x1bb   :  { %v280_v14 = vadd.f32 %v279_v13, %v278_v11 }
 0x1bd   :  { %v225_v15 = vadd.f32 %v280_v14, %v245_v12 }
 0x1bf   :  { %229 = vst.msk [vmem:[#allocation2] sm:$0xff] %vm228_vm1, %v225_v15 }
 0x1c0   :  { %334 = shalt.err (!%p331_p4)
}
 0x1c1   :  { %s335_s27 = scalar_lea.hbm %s525_s5, 128 }
 0x1c2   :  { %p336_p5 = scmp.ne.s32.totalorder %s525_s5, %s335_s27  ;;  %p339_p6 = scmp.lt.u32.totalorder %s335_s27, %s525_s5 }
 0x1c4   :  { %p341_p7 = pnand %p339_p6, %p336_p5 }
 0x1c6   :  { %344 = shalt.err (!%p341_p7)
}
 0x1c7   :  { %239 = dma.vmem_to_hbm [thread:$0]  %s237_s24, 128, %s525_s5, [#allocation3]  }
 0x1c8   :  { %345 = dma.done.wait [#allocation3], 128  }
 0x1c9   :  { %346 = vsyncadd [#allocation3], 4294967168 }
 0x1ca   :  { %243 = vsyncpa [#allocation3], 1 }

</bundles_post_ra>
